<compile_context>
chip_gen: v7x
topology: tpu7x:2x2x1
jax: 0.10.0
libtpu: 0.0.40
codegen_flags: <defaults>
</compile_context>

<pallas_src>
import jax
import jax.numpy as jnp
from jax import lax
from jax.experimental import pallas as pl
from jax.experimental.pallas import tpu as pltpu


def _round_up(x, m):
    return ((x + m - 1) // m) * m


def _aligned_divisors(dim, align):
    """Divisors of `dim` that are multiples of `align`, descending (dim % align == 0)."""
    q = dim // align
    return [f * align for f in range(q, 0, -1) if q % f == 0]


def _largest_aligned_divisor_leq(dim, align, cap):
    for d in _aligned_divisors(dim, align):
        if d <= cap:
            return d
    return align


def _pick_tiles(M_pad, N_pad, K_pad, m_align, in_bytes, out_bytes, vmem_budget):
    """Pick (tm, tn, tk) that exactly divide the aligned dims (no tile padding)."""

    def working_set(tm, tn, tk):
        # Double-buffered X and W^T input blocks + double-buffered f32 output
        # block (also the accumulator) + bias.
        return (2 * (tm * tk + tk * tn) * in_bytes
                + 2 * tm * tn * out_bytes
                + 2 * tn * out_bytes)

    tk = _largest_aligned_divisor_leq(K_pad, 128, 2048)
    tn = _largest_aligned_divisor_leq(N_pad, 128, 512)

    # Prefer tm covering the whole (aligned) batch so every W^T block is DMA'd
    # from HBM exactly once (the W read dominates HBM traffic for a linear head).
    tm_candidates = []
    if M_pad <= 1024:
        tm_candidates.append(M_pad)
    tm_candidates += [t for t in _aligned_divisors(M_pad, m_align) if t <= 256]

    tm = None
    for cand in tm_candidates:
        if working_set(cand, tn, tk) <= vmem_budget:
            tm = cand
            break
    if tm is None:
        tm = m_align
        while working_set(tm, tn, tk) > vmem_budget and tk > 128:
            tk = _largest_aligned_divisor_leq(K_pad, 128, tk - 128)
        while working_set(tm, tn, tk) > vmem_budget and tn > 128:
            tn = _largest_aligned_divisor_leq(N_pad, 128, tn - 128)

    # v7x megacore: keep >= 2 blocks on a "parallel" grid axis when possible so
    # both TensorCores get work (per-step overhead elsewhere is negligible).
    if (M_pad // tm) * (N_pad // tn) == 1 and N_pad >= 2 * 128:
        tn = _largest_aligned_divisor_leq(N_pad, 128, N_pad // 2)

    return tm, tn, tk


def _linear_kernel_single_k(x_ref, wt_ref, b_ref, o_ref):
    # Whole K reduction in one block: fused matmul + bias, single store.
    o_ref[...] = (
        jnp.dot(x_ref[...], wt_ref[...], preferred_element_type=jnp.float32)
        + b_ref[...]
    ).astype(o_ref.dtype)


def _linear_kernel_multi_k(x_ref, wt_ref, b_ref, o_ref):
    # o_ref's block index is constant along the K grid axis, so it stays
    # resident in VMEM and doubles as the f32 accumulator (no scratch buffer).
    # Initializing it with the bias removes the separate bias-add pass.
    @pl.when(pl.program_id(2) == 0)
    def _():
        o_ref[...] = jnp.broadcast_to(b_ref[...], o_ref.shape).astype(o_ref.dtype)

    o_ref[...] += jnp.dot(x_ref[...], wt_ref[...],
                          preferred_element_type=jnp.float32)


class XFerLearningPallas:
    """Pallas-TPU equivalent of XFerLearning (a single nn.Linear regression head)."""

    def __init__(self, weight, bias, *, compute_dtype=jnp.bfloat16,
                 vmem_budget_bytes=18 * 1024 * 1024):
        num_output, num_hidden = weight.shape
        assert bias.shape == (num_output,)
        self.num_output = int(num_output)
        self.num_hidden = int(num_hidden)
        self.compute_dtype = jnp.dtype(compute_dtype)
        # bf16 packs two rows per sublane -> (16, 128) min tile; f32 -> (8, 128).
        self.m_align = 16 if self.compute_dtype.itemsize < 4 else 8
        self.vmem_budget_bytes = int(vmem_budget_bytes)

        self.K_pad = _round_up(self.num_hidden, 128)
        self.N_pad = _round_up(self.num_output, 128)

        # One-time weight prep ("module init", never per forward call):
        #   * transpose to (H, O) so the kernel contracts lhs[-1] x rhs[0]
        #     with no per-tile transpose of the weight block,
        #   * zero-pad to lane alignment once,
        #   * cast to the MXU-native compute dtype (bf16 by default).
        # TODO(synk): if the weight is being trained, re-run this prep after
        # each optimizer step (or fold it into the update).
        w_t = jnp.asarray(weight).astype(self.compute_dtype).T
        self.w_t = jnp.pad(
            w_t, ((0, self.K_pad - self.num_hidden), (0, self.N_pad - self.num_output)))
        self.b = jnp.pad(
            jnp.asarray(bias).astype(jnp.float32),
            (0, self.N_pad - self.num_output)).reshape(1, self.N_pad)

        self._jit_forward = jax.jit(self._forward_impl)

    def _forward_impl(self, x, w_t, b):
        lead = x.shape[:-1]
        H = x.shape[-1]
        assert H == self.num_hidden
        x2 = x.reshape((-1, H))
        B = x2.shape[0]

        M_pad = _round_up(max(B, 1), self.m_align)
        K_pad, N_pad = self.K_pad, self.N_pad
        in_bytes = self.compute_dtype.itemsize
        out_bytes = 4

        tm, tn, tk = _pick_tiles(M_pad, N_pad, K_pad, self.m_align,
                                 in_bytes, out_bytes, self.vmem_budget_bytes)
        m_tiles, n_tiles, k_tiles = M_pad // tm, N_pad // tn, K_pad // tk

        # Only the (small) activation is padded per call; padding is limited to
        # (m_align, 128) alignment, never tile multiples.  Zero K padding is
        # required for correctness of the reduction; extra M rows are sliced off.
        x_c = x2.astype(self.compute_dtype)
        if M_pad != B or K_pad != H:
            x_c = jnp.pad(x_c, ((0, M_pad - B), (0, K_pad - H)))

        cost = pl.CostEstimate(
            flops=2 * M_pad * K_pad * N_pad,
            transcendentals=0,
            bytes_accessed=(M_pad * K_pad * in_bytes * n_tiles    # X (re-streamed per N tile)
                            + K_pad * N_pad * in_bytes * m_tiles  # W^T (re-streamed per M tile)
                            + N_pad * out_bytes * m_tiles         # bias
                            + M_pad * N_pad * out_bytes),         # output write
        )

        kernel = _linear_kernel_single_k if k_tiles == 1 else _linear_kernel_multi_k

        out = pl.pallas_call(
            kernel,
            out_shape=jax.ShapeDtypeStruct((M_pad, N_pad), jnp.float32),
            grid=(m_tiles, n_tiles, k_tiles),
            in_specs=[
                pl.BlockSpec((tm, tk), lambda i, j, k: (i, k)),   # X tile
                pl.BlockSpec((tk, tn), lambda i, j, k: (k, j)),   # W^T tile (pre-transposed)
                pl.BlockSpec((1, tn), lambda i, j, k: (0, j)),    # bias tile
            ],
            out_specs=pl.BlockSpec((tm, tn), lambda i, j, k: (i, j)),
            compiler_params=pltpu.CompilerParams(
                dimension_semantics=("parallel", "parallel", "arbitrary"),
                vmem_limit_bytes=32 * 1024 * 1024),
            cost_estimate=cost,
        )(x_c, w_t, b)

        if M_pad != B or N_pad != self.num_output:
            out = out[:B, :self.num_output]
        return out.reshape(lead + (self.num_output,))

    def __call__(self, x):
        return self._jit_forward(x, self.w_t, self.b)


if __name__ == "__main__":
    key = jax.random.PRNGKey(0)

    def make_case(k, batch, num_hidden, num_output):
        kx, kw, kb = jax.random.split(k, 3)
        x = jax.random.normal(kx, (batch, num_hidden), dtype=jnp.float32)
        bound = 1.0 / (num_hidden ** 0.5)
        w = jax.random.uniform(kw, (num_output, num_hidden), dtype=jnp.float32,
                               minval=-bound, maxval=bound)
        b = jax.random.uniform(kb, (num_output,), dtype=jnp.float32,
                               minval=-bound, maxval=bound)
        return x, w, b

    def bf16_reference(x, w, b):
        xr = x.astype(jnp.bfloat16).astype(jnp.float32)
        wr = w.astype(jnp.bfloat16).astype(jnp.float32)
        return jnp.dot(xr, wr.T, precision=lax.Precision.HIGHEST) + b

    k1, k2, k3 = jax.random.split(key, 3)

    # Case 1: tiny shape, f32 compute path — near-exact vs. an f32 reference.
    x1, w1, b1 = make_case(k1, batch=8, num_hidden=32, num_output=16)
    m1 = XFerLearningPallas(w1, b1, compute_dtype=jnp.float32)
    o1 = jax.block_until_ready(m1(x1))
    r1 = jnp.dot(x1, w1.T, precision=lax.Precision.HIGHEST) + b1
    assert o1.shape == r1.shape
    assert jnp.allclose(o1, r1, atol=1e-4, rtol=1e-4)

    # Case 2: non-power-of-two shapes, default bf16 compute — compared against
    # a bf16-rounded f32 reference (only summation-order differences remain).
    x2, w2, b2 = make_case(k2, batch=272, num_hidden=640, num_output=320)
    m2 = XFerLearningPallas(w2, b2)
    o2 = jax.block_until_ready(m2(x2))
    r2 = bf16_reference(x2, w2, b2)
    assert o2.shape == r2.shape
    assert jnp.allclose(o2, r2, atol=2e-3, rtol=2e-3)

    # Case 3: K larger than the max K tile — exercises the multi-K accumulator path.
    x3, w3, b3 = make_case(k3, batch=64, num_hidden=2560, num_output=256)
    m3 = XFerLearningPallas(w3, b3)
    o3 = jax.block_until_ready(m3(x3))
    r3 = bf16_reference(x3, w3, b3)
    assert o3.shape == r3.shape
    assert jnp.allclose(o3, r3, atol=4e-3, rtol=4e-3)

    print("KERNEL_OK")
</pallas_src>

<mosaic_0001>
module attributes {stable_mosaic.version = 11 : i64} {
  func.func @_linear_kernel_single_k(%arg0: i32, %arg1: i32, %arg2: i32, %arg3: memref<8x128xf32, #tpu.memory_space<vmem>>, %arg4: memref<128x128xf32, #tpu.memory_space<vmem>>, %arg5: memref<1x128xf32, #tpu.memory_space<vmem>>, %arg6: memref<8x128xf32, #tpu.memory_space<vmem>>) attributes {dimension_semantics = [#tpu.dimension_semantics<parallel>, #tpu.dimension_semantics<parallel>, #tpu.dimension_semantics<arbitrary>], iteration_bounds = array<i64: 1, 1, 1>, scalar_prefetch = 0 : i64, scratch_operands = 0 : i64, tpu.core_type = #tpu.core_type<tc>, window_params = [{transform_indices = @transform_0, window_bounds = array<i64: 8, 128>}, {transform_indices = @transform_1, window_bounds = array<i64: 128, 128>}, {transform_indices = @transform_2, window_bounds = array<i64: 1, 128>}, {transform_indices = @transform_3, window_bounds = array<i64: 8, 128>}]} {
    %c0 = arith.constant 0 : index
    %c0_0 = arith.constant 0 : index
    %0 = vector.load %arg3[%c0, %c0_0] : memref<8x128xf32, #tpu.memory_space<vmem>>, vector<8x128xf32>
    %c0_1 = arith.constant 0 : index
    %c0_2 = arith.constant 0 : index
    %1 = vector.load %arg4[%c0_1, %c0_2] : memref<128x128xf32, #tpu.memory_space<vmem>>, vector<128x128xf32>
    %cst = arith.constant dense<0.000000e+00> : vector<8x128xf32>
    %2 = tpu.matmul %0, %1, %cst {dimension_numbers = #tpu.dot_dimension_numbers<[1], [0], [0], [1], [0, 0, 1, 1], [], []>} : vector<8x128xf32>, vector<128x128xf32>, vector<8x128xf32> -> vector<8x128xf32>
    %c0_3 = arith.constant 0 : index
    %c0_4 = arith.constant 0 : index
    %3 = vector.load %arg5[%c0_3, %c0_4] : memref<1x128xf32, #tpu.memory_space<vmem>>, vector<1x128xf32>
    %4 = vector.broadcast %3 : vector<1x128xf32> to vector<8x128xf32>
    %5 = arith.addf %2, %4 : vector<8x128xf32>
    %c0_5 = arith.constant 0 : index
    %c0_6 = arith.constant 0 : index
    %6 = vector.load %arg6[%c0_5, %c0_6] : memref<8x128xf32, #tpu.memory_space<vmem>>, vector<8x128xf32>
    tpu.vector_store %arg6[%c0_5, %c0_6], %5 {strides = array<i32>} : memref<8x128xf32, #tpu.memory_space<vmem>>, vector<8x128xf32>,
    return
  }
  func.func @transform_0(%arg0: i32, %arg1: i32, %arg2: i32) -> (i32, i32) {
    %c0_i32 = arith.constant 0 : i32
    return %arg0, %arg2 : i32, i32
  }
  func.func @transform_1(%arg0: i32, %arg1: i32, %arg2: i32) -> (i32, i32) {
    %c0_i32 = arith.constant 0 : i32
    return %arg2, %arg1 : i32, i32
  }
  func.func @transform_2(%arg0: i32, %arg1: i32, %arg2: i32) -> (i32, i32) {
    %c0_i32 = arith.constant 0 : i32
    %c0_i32_0 = arith.constant 0 : i32
    return %c0_i32, %arg1 : i32, i32
  }
  func.func @transform_3(%arg0: i32, %arg1: i32, %arg2: i32) -> (i32, i32) {
    %c0_i32 = arith.constant 0 : i32
    return %arg0, %arg1 : i32, i32
  }
}

</mosaic_0001>

<bundles_post_ra>
// kernel: _forward_impl.1
= control target key start
LH: loop header
LB: loop body
LE: loop exit
PB: predicated region body
PF: predicated region fallthrough
CT: control target
= control target key end

     0   :  { %8 = vsyncpa [#allocation3], 0  ;;  %s328_s0 = inlined_call_operand.vmem [shape: f32[8,128], index: 0, kind: input, shape index: {}]   ;;  %s329_s1 = inlined_call_operand.hbm [shape: f32[128,128], index: 1, kind: input, shape index: {}]   ;;  %s330_s2 = inlined_call_operand.vmem [shape: f32[1,128], index: 2, kind: input, shape index: {}]   ;;  %s331_s3 = inlined_call_operand.hbm [shape: f32[8,128], index: 3, kind: output, shape index: {}]  }
   0x1   :  { %9 = vsyncpa [#allocation4], 0  ;;  %s271_s12 = smov [#allocation2]   ;;  %s223_s16 = scalar_lea.hbm %s329_s1, 2048 }
   0x2   :  { %s17_s13 = sshll.u32 %s271_s12, 4  ;;  %p224_p0 = scmp.ne.s32.totalorder %s329_s1, %s223_s16  ;;  %s18_s13 = int_to_ptr.vmem [resolvable:$true] %s17_s13 }
   0x3   :  { %p227_p1 = scmp.lt.u32.totalorder %s223_s16, %s329_s1 }
   0x5   :  { %p229_p2 = pnand %p227_p1, %p224_p0 }
   0x7   :  { %232 = shalt.err (!%p229_p2)
}
   0x8   :  { %s233_s21 = scalar_lea.vmem %s18_s13, 2048  ;;  %p238_p4 = scmp.lt.s32.totalorder %s18_s13, %s18_s13 }
   0x9   :  { %p234_p3 = scmp.ne.s32.totalorder %s18_s13, %s233_s21  ;;  %p239_p5 = scmp.lt.s32.totalorder %s233_s21, %s233_s21 }
   0xb   :  { %p240_p6 = por %p239_p5, %p238_p4 }
   0xd   :  { %p241_p7 = pnand %p240_p6, %p234_p3 }
   0xf   :  { %244 = shalt.err (!%p241_p7)
}
  0x10   :  { %s272_s22 = smov 128   ;;  %s273_s23 = smov 8  }
  0x11   :  { %23 = dma.hbm_to_vmem [thread:$0]  %s329_s1, 2048, %s18_s13, [#allocation3], %s272_s22, %s272_s22, %s273_s23  }
  0x12   :  { %267 = dma.done.wait [#allocation3], 2048  }
  0x13   :  { %268 = vsyncadd [#allocation3], 4294965248  ;;  %v274_v0 = vmov 0.0|0.0   ;;  %vm275_vm0 = vmmov 0   ;;  %v276_v1 = vmov 0.0   ;;  %v30_v2 = vld [vmem:[#allocation2] sm:$0xff] }
  0x14   :  { %192 = vmatprep.subr.bf16.mxu0 %v274_v0  ;;  %189 = vmatprep.mubr.msk.f32.mxu0 %vm275_vm0, %v276_v1  ;;  %v31_v3 = vld [vmem:[#allocation2 + $0x8] sm:$0xff]  ;;  %v32_v4 = vld [vmem:[#allocation2 + $0x10] sm:$0xff]  ;;  %v33_v6 = vld [vmem:[#allocation2 + $0x18] sm:$0xff]  ;;  %s277_s29 = smov [#allocation5]  }
  0x15   :  { %v193_v5 = vpack.c.bf16 %v31_v3, %v30_v2  ;;  %v196_v7 = vpack.c.bf16 %v33_v6, %v32_v4  ;;  %v34_v8 = vld [vmem:[#allocation2 + $0x20] sm:$0xff]  ;;  %v35_v9 = vld [vmem:[#allocation2 + $0x28] sm:$0xff]  ;;  %v36_v11 = vld [vmem:[#allocation2 + $0x30] sm:$0xff]  ;;  %s130_s30 = sshll.u32 %s277_s29, 4  ;;  %s131_s30 = int_to_ptr.vmem [resolvable:$true] %s130_s30 }
  0x16   :  { %v199_v10 = vpack.c.bf16 %v35_v9, %v34_v8  ;;  %v37_v12 = vld [vmem:[#allocation2 + $0x38] sm:$0xff]  ;;  %v38_v14 = vld [vmem:[#allocation2 + $0x40] sm:$0xff]  ;;  %v39_v15 = vld [vmem:[#allocation2 + $0x48] sm:$0xff]  ;;  %s245_s4 = scalar_lea.vmem %s131_s30, 128  ;;  %p250_p9 = scmp.lt.s32.totalorder %s131_s30, %s131_s30 }
  0x17   :  { %194 = vmatpush3.bf16.msra.mxu0 %v193_v5  ;;  %v202_v13 = vpack.c.bf16 %v37_v12, %v36_v11  ;;  %v205_v16 = vpack.c.bf16 %v39_v15, %v38_v14  ;;  %v40_v17 = vld [vmem:[#allocation2 + $0x50] sm:$0xff]  ;;  %v41_v18 = vld [vmem:[#allocation2 + $0x58] sm:$0xff]  ;;  %v42_v20 = vld [vmem:[#allocation2 + $0x60] sm:$0xff]  ;;  %p246_p8 = scmp.ne.s32.totalorder %s131_s30, %s245_s4  ;;  %p251_p10 = scmp.lt.s32.totalorder %s245_s4, %s245_s4 }
  0x18   :  { %195 = vmatprep.subr.bf16.mxu0 %v274_v0  ;;  %v208_v19 = vpack.c.bf16 %v41_v18, %v40_v17  ;;  %v43_v21 = vld [vmem:[#allocation2 + $0x68] sm:$0xff]  ;;  %v44_v23 = vld [vmem:[#allocation2 + $0x70] sm:$0xff]  ;;  %v45_v24 = vld [vmem:[#allocation2 + $0x78] sm:$0xff] }
  0x19   :  { %v211_v22 = vpack.c.bf16 %v43_v21, %v42_v20  ;;  %v214_v25 = vpack.c.bf16 %v45_v24, %v44_v23  ;;  %v29_v26 = vld [vmem:[%s328_s0] sm:$0xff]  ;;  %p252_p11 = por %p251_p10, %p250_p9 }
  0x1a   :  { %v139_v27 = vld [vmem:[%s330_s2] ss:$0 sm:$0xff] }
  0x1b   :  { %197 = vmatpush3.bf16.msra.mxu0 %v196_v7  ;;  %p253_p12 = pnand %p252_p11, %p246_p8 }
  0x1c   :  { %198 = vmatprep.subr.bf16.mxu0 %v274_v0 }
  0x1f   :  { %200 = vmatpush3.bf16.msra.mxu0 %v199_v10 }
  0x20   :  { %201 = vmatprep.subr.bf16.mxu0 %v274_v0 }
  0x23   :  { %203 = vmatpush3.bf16.msra.mxu0 %v202_v13 }
  0x24   :  { %204 = vmatprep.subr.bf16.mxu0 %v274_v0 }
  0x27   :  { %206 = vmatpush3.bf16.msra.mxu0 %v205_v16 }
  0x28   :  { %207 = vmatprep.subr.bf16.mxu0 %v274_v0 }
  0x2b   :  { %209 = vmatpush3.bf16.msra.mxu0 %v208_v19 }
  0x2c   :  { %210 = vmatprep.subr.bf16.mxu0 %v274_v0 }
  0x2f   :  { %212 = vmatpush3.bf16.msra.mxu0 %v211_v22 }
  0x30   :  { %213 = vmatprep.subr.bf16.mxu0 %v274_v0 }
  0x33   :  { %215 = vmatpush3.bf16.msra.mxu0 %v214_v25 }
  0x36   :  { %190 = vmatmul.mubr.f32.vlgmr.msra.gmra.mrb[0].mxu0 %v29_v26 }
 0x109   :  { %v119_v28 = vpop.f32.mrb[0].mxu0 }
 0x10a   :  { %v120_v29 = vadd.f32 %v139_v27, %v119_v28  ;;  %v191_v30 = vpop.f32.mrb[1].mxu0 }
 0x10c   :  { %123 = vst [vmem:[#allocation5] sm:$0xff] %v120_v29 }
 0x10d   :  { %256 = shalt.err (!%p253_p12)
}
 0x10e   :  { %s257_s6 = scalar_lea.hbm %s331_s3, 128 }
 0x10f   :  { %p258_p13 = scmp.ne.s32.totalorder %s331_s3, %s257_s6  ;;  %p261_p0 = scmp.lt.u32.totalorder %s257_s6, %s331_s3 }
 0x111   :  { %p263_p1 = pnand %p261_p0, %p258_p13 }
 0x113   :  { %266 = shalt.err (!%p263_p1)
}
 0x114   :  { %133 = dma.vmem_to_hbm [thread:$0]  %s131_s30, 128, %s331_s3, [#allocation4]  }
 0x115   :  { %269 = dma.done.wait [#allocation4], 128  }
 0x116   :  { %270 = vsyncadd [#allocation4], 4294967168 }
 0x117   :  { %137 = vsyncpa [#allocation3], 1 }
 0x118   :  { %138 = vsyncpa [#allocation4], 1 }

</bundles_post_ra>
